<compile_context>
chip_gen: v7x
topology: tpu7x:2x2x1
jax: 0.10.0
libtpu: 0.0.40
codegen_flags: <defaults>
</compile_context>

<pallas_src>
import jax
import jax.numpy as jnp
from jax.experimental import pallas as pl
from jax.experimental.pallas import tpu as pltpu


def _linear_kernel(x_ref, w_ref, b_ref, o_ref):
    # x_ref: (TB, D) VMEM tile of the input rows
    # w_ref: (1, D)  VMEM resident weight row (torch layout)
    # b_ref: (1, 1)  SMEM scalar bias
    # o_ref: (1, TB) VMEM lane-dense output slab for this tile
    x = x_ref[...]                      # (TB, D) f32
    w = w_ref[...]                      # (1, D)  f32, broadcast over rows
    b = b_ref[0, 0]                     # scalar bias from SMEM

    # VPU elementwise multiply + XLU lane reduction, f32 accumulation.
    y = jnp.sum(x * w, axis=-1) + b     # (TB,) f32

    # Store lane-dense: one wide row per grid step.
    o_ref[...] = y.reshape(1, -1).astype(o_ref.dtype)


def linear_forward(x, w, b, *, tile_b=512):
    """y = x @ w.T + b  (equivalent to nn.Linear(input_size, 1).forward(x)).

    x: (B, D) float32
    w: (1, D) float32   -- torch nn.Linear weight layout (out_features=1, in_features=D)
    b: (1,)   float32
    """
    x = jnp.asarray(x, jnp.float32)
    w = jnp.asarray(w, jnp.float32)
    B, D = x.shape
    assert w.shape == (1, D)

    # Batch tile selection:
    #  - small B: a single tile rounded up to a sublane multiple of 8
    #  - large B: fixed 512-row tiles (multiple of 128 -> legal lane-dense out block)
    if B <= tile_b:
        TB = max(8, pl.cdiv(B, 8) * 8)
    else:
        TB = tile_b
    num_tiles = pl.cdiv(B, TB)
    B_pad = num_tiles * TB
    if B_pad != B:
        x = jnp.pad(x, ((0, B_pad - B), (0, 0)))

    # Bias as a (1, 1) SMEM scalar.
    b_smem = jnp.asarray(b, jnp.float32).reshape(1, 1)

    out = pl.pallas_call(
        _linear_kernel,
        out_shape=jax.ShapeDtypeStruct((1, B_pad), jnp.float32),
        grid_spec=pltpu.PrefetchScalarGridSpec(
            num_scalar_prefetch=0,
            grid=(num_tiles,),
            in_specs=[
                # x: one (TB, D) tile per grid step, auto double-buffered.
                pl.BlockSpec((TB, D), lambda i: (i, 0)),
                # weight row: resident across all steps.
                pl.BlockSpec((1, D), lambda i: (0, 0)),
                # bias: whole array in SMEM, scalar read inside the kernel.
                pl.BlockSpec(memory_space=pltpu.MemorySpace.SMEM),
            ],
            # lane-dense output slab per tile.
            out_specs=pl.BlockSpec((1, TB), lambda i: (0, i)),
        ),
        compiler_params=pltpu.CompilerParams(
            # Rows are independent -> parallel (megacore sharding on v7x).
            dimension_semantics=("parallel",),
        ),
    )(x, w, b_smem)

    # Strip padding and restore the (B, 1) column expected from nn.Linear(D, 1).
    return out[0, :B].reshape(B, 1)


if __name__ == "__main__":
    # Small shapes consistent with the module: Model(input_size) -> Linear(D, 1)
    batch, input_size = 8, 4

    key = jax.random.PRNGKey(0)
    kx, kw, kb = jax.random.split(key, 3)

    # Deterministic parameter init (PyTorch-style uniform(-1/sqrt(D), 1/sqrt(D)))
    bound = 1.0 / (input_size ** 0.5)
    w = jax.random.uniform(kw, (1, input_size), jnp.float32, -bound, bound)  # (out, in)
    b = jax.random.uniform(kb, (1,), jnp.float32, -bound, bound)
    x = jax.random.normal(kx, (batch, input_size), jnp.float32)

    y = linear_forward(x, w, b)
    jax.block_until_ready(y)

    # Reference check against plain JAX (same math as torch's nn.Linear)
    y_ref = x @ w.T + b
    assert y.shape == (batch, 1)
    assert jnp.allclose(y, y_ref, atol=1e-5, rtol=1e-5)

    print("KERNEL_OK")
</pallas_src>

<mosaic_0001>
module attributes {stable_mosaic.version = 11 : i64} {
  func.func @_linear_kernel(%arg0: i32, %arg1: memref<8x4xf32, #tpu.memory_space<vmem>>, %arg2: memref<1x4xf32, #tpu.memory_space<vmem>>, %arg3: memref<1x1xf32, #tpu.memory_space<smem>>, %arg4: memref<1x8xf32, #tpu.memory_space<vmem>>) attributes {dimension_semantics = [#tpu.dimension_semantics<parallel>], iteration_bounds = array<i64: 1>, scalar_prefetch = 0 : i64, scratch_operands = 0 : i64, tpu.core_type = #tpu.core_type<tc>, window_params = [{transform_indices = @transform_0, window_bounds = array<i64: 8, 4>}, {pipeline_mode = #tpu.pipeline_mode<synchronous>, transform_indices = @transform_1, window_bounds = array<i64: 1, 4>}, {transform_indices = @transform_2, window_bounds = array<i64: 1, 1>}, {transform_indices = @transform_3, window_bounds = array<i64: 1, 8>}]} {
    %c0 = arith.constant 0 : index
    %c0_0 = arith.constant 0 : index
    %0 = vector.load %arg1[%c0, %c0_0] : memref<8x4xf32, #tpu.memory_space<vmem>>, vector<8x4xf32>
    %c0_1 = arith.constant 0 : index
    %c0_2 = arith.constant 0 : index
    %1 = vector.load %arg2[%c0_1, %c0_2] : memref<1x4xf32, #tpu.memory_space<vmem>>, vector<1x4xf32>
    %c0_3 = arith.constant 0 : index
    %c0_4 = arith.constant 0 : index
    %2 = memref.load %arg3[%c0_3, %c0_4] : memref<1x1xf32, #tpu.memory_space<smem>>
    %3 = vector.broadcast %1 : vector<1x4xf32> to vector<8x4xf32>
    %4 = arith.mulf %0, %3 : vector<8x4xf32>
    %cst = arith.constant dense<0.000000e+00> : vector<8xf32>
    %5 = vector.multi_reduction <add>, %4, %cst [1] : vector<8x4xf32> to vector<8xf32>
    %6 = vector.broadcast %2 : f32 to vector<8xf32>
    %7 = arith.addf %5, %6 : vector<8xf32>
    %8 = vector.shape_cast %7 : vector<8xf32> to vector<1x8xf32>
    %c0_5 = arith.constant 0 : index
    %c0_6 = arith.constant 0 : index
    %9 = vector.load %arg4[%c0_5, %c0_6] : memref<1x8xf32, #tpu.memory_space<vmem>>, vector<1x8xf32>
    tpu.vector_store %arg4[%c0_5, %c0_6], %8 {strides = array<i32>} : memref<1x8xf32, #tpu.memory_space<vmem>>, vector<1x8xf32>,
    return
  }
  func.func @transform_0(%arg0: i32) -> (i32, i32) {
    %c0_i32 = arith.constant 0 : i32
    %c0_i32_0 = arith.constant 0 : i32
    return %arg0, %c0_i32 : i32, i32
  }
  func.func @transform_1(%arg0: i32) -> (i32, i32) {
    %c0_i32 = arith.constant 0 : i32
    %c0_i32_0 = arith.constant 0 : i32
    %c0_i32_1 = arith.constant 0 : i32
    return %c0_i32, %c0_i32_0 : i32, i32
  }
  func.func @transform_2(%arg0: i32) -> (i32, i32) {
    %c0_i32 = arith.constant 0 : i32
    %c0_i32_0 = arith.constant 0 : i32
    %c0_i32_1 = arith.constant 0 : i32
    return %c0_i32, %c0_i32_0 : i32, i32
  }
  func.func @transform_3(%arg0: i32) -> (i32, i32) {
    %c0_i32 = arith.constant 0 : i32
    %c0_i32_0 = arith.constant 0 : i32
    return %c0_i32, %arg0 : i32, i32
  }
}

</mosaic_0001>

<bundles_post_ra>
// kernel: tpu_custom_call.1
= control target key start
LH: loop header
LB: loop body
LE: loop exit
PB: predicated region body
PF: predicated region fallthrough
CT: control target
= control target key end

     0   :  { %vm26_vm0 = vcmask 31744   ;;  %s124_s0 = inlined_call_operand.vmem [shape: f32[8,4], index: 0, kind: input, shape index: {}]   ;;  %s125_s1 = inlined_call_operand.vmem [shape: f32[1,4], index: 1, kind: input, shape index: {}]   ;;  %s126_s2 = inlined_call_operand.<no memory space> [shape: f32[1,1], index: 2, kind: input, shape index: {}]   ;;  %s127_s3 = inlined_call_operand.hbm [shape: f32[1,8], index: 3, kind: output, shape index: {}]  }
   0x1   :  { %v16_v0 = vld [vmem:[%s124_s0] sm:$0xff] }
   0x2   :  { %v56_v1 = vld [vmem:[%s125_s1] ss:$0 sm:$0xff] }
   0x3   :  { %9 = vsyncpa [#allocation4], 0  ;;  %v25_v2 = vmul.f32 %v56_v1, %v16_v0  ;;  %v33_v4 = vlaneseq  ;;  %v30_v7 = vstv %s126_s2  ;;  %s82_s18 = smov [#allocation3]   ;;  %vm40_vm1 = vcmask 57344  }
   0x4   :  { %s48_s0 = sshll.u32 %s82_s18, 4  ;;  %s49_s0 = int_to_ptr.vmem [resolvable:$true] %s48_s0 }
   0x5   :  { %v27_v3 = vsel %vm26_vm0, %v25_v2, 0.0  ;;  %v34_v5 = vand.u32 127, %v33_v4  ;;  %v36_v6 = vshrl.u32 %v33_v4, 7  ;;  %s58_s1 = scalar_lea.vmem %s49_s0, 16  ;;  %s62_s19 = scalar_lea.vmem %s49_s0, 32 }
   0x6   :  { %28 = vadd.xlane.f32.xlu0 %v27_v3  ;;  %p59_p0 = scmp.ne.s32.totalorder %s49_s0, %s58_s1  ;;  %p63_p1 = scmp.lt.s32.totalorder %s49_s0, %s49_s0 }
   0x7   :  { %v37_v8 = vsub.s32 %v34_v5, %v36_v6  ;;  %p64_p2 = scmp.lt.s32.totalorder %s62_s19, %s58_s1 }
   0x9   :  { %p65_p3 = por %p64_p2, %p63_p1 }
   0xb   :  { %p66_p4 = pnand %p65_p3, %p59_p0 }
  0x93   :  { %v29_v9 = vpop.xlane.xlu0 %28 }
  0x94   :  { %v31_v10 = vadd.f32 %v30_v7, %v29_v9 }
  0x96   :  { %v38_v11 = vrot.slane %v31_v10, %v37_v8 }
  0x98   :  { %41 = vst.msk [vmem:[#allocation3] sm:$0x1] %vm40_vm1, %v38_v11 }
  0x99   :  { %69 = shalt.err (!%p66_p4)
}
  0x9a   :  { %s70_s2 = scalar_lea.hbm %s127_s3, 16 }
  0x9b   :  { %p71_p5 = scmp.ne.s32.totalorder %s127_s3, %s70_s2  ;;  %p74_p6 = scmp.lt.u32.totalorder %s70_s2, %s127_s3 }
  0x9d   :  { %p76_p7 = pnand %p74_p6, %p71_p5 }
  0x9f   :  { %79 = shalt.err (!%p76_p7)
}
  0xa0   :  { %51 = dma.vmem_to_hbm [thread:$0]  %s49_s0, 16, %s127_s3, [#allocation4]  }
  0xa1   :  { %80 = dma.done.wait [#allocation4], 16  }
  0xa2   :  { %81 = vsyncadd [#allocation4], 4294967280 }
  0xa3   :  { %55 = vsyncpa [#allocation4], 1 }

</bundles_post_ra>
